<compile_context>
chip_gen: v5e
topology: v5e:2x2
jax: 0.10.0
libtpu: 0.0.40
codegen_flags: <defaults>
</compile_context>

<pallas_src>
import functools

import jax
import jax.numpy as jnp
from jax.experimental import pallas as pl
from jax.experimental.pallas import tpu as pltpu


def _round_up(x, m):
    return (x + m - 1) // m * m


def _qrnn_kernel(x_ref, w_ref, b_ref, h0_ref, out_h_ref, out_c_ref,
                 c_scratch, gate_scratch, *, t_block, b_tile, hp, seq_len,
                 output_gate, zoneout):
    tb = pl.program_id(1)

    # New batch tile (or very first step): (re)load the initial cell state.
    @pl.when(tb == 0)
    def _():
        c_scratch[...] = h0_ref[...].astype(jnp.float32)

    # ---- One MXU matmul for the whole time block (bf16 in, f32 accumulate). --
    x = x_ref[0]                                            # (T*B, Kp) bf16
    y = jnp.dot(x, w_ref[...], preferred_element_type=jnp.float32) + b_ref[...]

    # ---- Gate nonlinearities batched over the whole block (EUP), stored to ---
    # ---- VMEM scratch with 128-aligned lane slices.                        ---
    gate_scratch[:, :, 0:hp] = jnp.tanh(y[:, 0:hp]).reshape(t_block, b_tile, hp)
    f = jax.nn.sigmoid(y[:, hp:2 * hp])
    if zoneout:
        # Eval-mode zoneout: F *= (1 - zoneout).
        # TODO(synk): training-mode zoneout (Bernoulli mask on F) not implemented.
        f = f * (1.0 - zoneout)
    gate_scratch[:, :, hp:2 * hp] = f.reshape(t_block, b_tile, hp)
    if output_gate:
        gate_scratch[:, :, 2 * hp:3 * hp] = (
            jax.nn.sigmoid(y[:, 2 * hp:3 * hp]).reshape(t_block, b_tile, hp))

    # ---- ForgetMult recurrence over the T_BLOCK precomputed gates (VPU). -----
    def step(t, c_prev):
        g = gate_scratch[t]                                 # (b_tile, n_gates*hp)
        z_t = g[:, 0:hp]
        f_t = g[:, hp:2 * hp]
        c_new = c_prev + f_t * (z_t - c_prev)               # == f*z + (1-f)*c_prev
        valid = (tb * t_block + t) < seq_len                # mask padded timesteps
        c = jnp.where(valid, c_new, c_prev)
        h = g[:, 2 * hp:3 * hp] * c if output_gate else c
        out_h_ref[t] = h.astype(out_h_ref.dtype)
        return c

    c_final = jax.lax.fori_loop(0, t_block, step, c_scratch[...], unroll=True)
    c_scratch[...] = c_final

    @pl.when(tb == pl.num_programs(1) - 1)
    def _():
        out_c_ref[...] = c_final.astype(out_c_ref.dtype)


def qrnn_layer_forward(X, W, b, hidden=None, *, window=1, output_gate=True,
                       zoneout=0.0, prevX=None, t_block=None, b_tile=None):
    """QRNNLayer.forward.
    X: (seq_len, batch, input_size)
    W: (window*input_size, n_gates*hidden_size)   (transposed nn.Linear weight)
    b: (n_gates*hidden_size,)
    Returns (H, C_last): (seq_len, batch, hidden), (1, batch, hidden)."""
    assert window in (1, 2)
    seq_len, batch, _ = X.shape
    n_gates = 3 if output_gate else 2
    hidden_size = W.shape[1] // n_gates

    # Convolutional-window source (pure reshuffle; not the hot path).
    # TODO(synk): for window=2, form the shifted pair in-kernel from a
    # (T_BLOCK+1)-step X block instead of materializing the concat in HBM.
    if window == 1:
        source = X
    else:
        xm1_first = prevX if prevX is not None else X[:1] * 0
        Xm1 = jnp.concatenate([xm1_first, X[:-1]], 0) if seq_len > 1 else xm1_first
        source = jnp.concatenate([X, Xm1], 2)
    src_dim = source.shape[-1]

    if hidden is None:
        hidden = jnp.zeros((batch, hidden_size), X.dtype)

    # Lane/sublane-friendly padded sizes.
    hp = _round_up(hidden_size, 128)      # lane-dense gates / H stores
    kp = _round_up(src_dim, 128)          # aligned MXU K dim
    bp = _round_up(batch, 8)              # sublane-aligned batch

    if b_tile is None:                    # split batch across 2 TCs when possible
        b_tile = bp // 2 if (bp >= 16 and bp % 16 == 0) else bp
    assert bp % b_tile == 0 and b_tile % 8 == 0
    n_bt = bp // b_tile

    if t_block is None:                   # aim for >= 256 matmul rows
        t_block = max(1, min(seq_len, -(-256 // b_tile)))
    s_pad = _round_up(seq_len, t_block)
    n_tb = s_pad // t_block

    # ---- Pad + cast host-side (one cheap XLA pass). --------------------------
    src_p = jnp.pad(source.astype(jnp.bfloat16),
                    ((0, s_pad - seq_len), (0, bp - batch), (0, kp - src_dim)))
    # (s_pad, bp, kp) -> (n_bt, s_pad*b_tile, kp): within each batch tile the rows
    # are time-major, so each grid step reads one contiguous (T*B, Kp) matmul slab
    # and the kernel needs no relayout of the bf16 operand.
    src_p = src_p.reshape(s_pad, n_bt, b_tile, kp).transpose(1, 0, 2, 3)
    src_p = src_p.reshape(n_bt, s_pad * b_tile, kp)

    w3 = W.reshape(src_dim, n_gates, hidden_size)
    w_p = jnp.pad(w3, ((0, kp - src_dim), (0, 0), (0, hp - hidden_size)))
    w_p = w_p.reshape(kp, n_gates * hp).astype(jnp.bfloat16)
    b_p = jnp.pad(b.reshape(n_gates, hidden_size).astype(jnp.float32),
                  ((0, 0), (0, hp - hidden_size))).reshape(1, n_gates * hp)
    h0_p = jnp.pad(hidden.astype(jnp.float32),
                   ((0, bp - batch), (0, hp - hidden_size)))

    out_dtype = X.dtype
    osz = jnp.dtype(out_dtype).itemsize

    # VMEM budget: double-buffered X/H/C blocks + resident W/b/h0 + scratch.
    est = (2 * (t_block * b_tile * kp * 2           # X blocks (bf16)
                + t_block * b_tile * hp * osz       # H blocks
                + b_tile * hp * osz                 # C block
                + kp * n_gates * hp * 2             # W (bf16, resident)
                + n_gates * hp * 4                  # bias
                + b_tile * hp * 4)                  # h0
           + t_block * b_tile * n_gates * hp * 4    # gate scratch
           + b_tile * hp * 4)                       # c scratch
    vmem_limit = int(min(max(2 * est, 32 * 1024 * 1024), 64 * 1024 * 1024))

    kernel = functools.partial(_qrnn_kernel, t_block=t_block, b_tile=b_tile,
                               hp=hp, seq_len=seq_len, output_gate=output_gate,
                               zoneout=float(zoneout))

    H_pad, C_pad = pl.pallas_call(
        kernel,
        out_shape=(
            jax.ShapeDtypeStruct((s_pad, bp, hp), out_dtype),
            jax.ShapeDtypeStruct((bp, hp), out_dtype),
        ),
        grid_spec=pltpu.PrefetchScalarGridSpec(
            num_scalar_prefetch=0,
            grid=(n_bt, n_tb),
            in_specs=[
                pl.BlockSpec((1, t_block * b_tile, kp),
                             lambda bt, tb: (bt, tb, 0)),            # X slab
                pl.BlockSpec((kp, n_gates * hp), lambda bt, tb: (0, 0)),  # W
                pl.BlockSpec((1, n_gates * hp), lambda bt, tb: (0, 0)),   # bias
                pl.BlockSpec((b_tile, hp), lambda bt, tb: (bt, 0)),       # h0
            ],
            out_specs=[
                pl.BlockSpec((t_block, b_tile, hp),
                             lambda bt, tb: (tb, bt, 0)),             # H
                pl.BlockSpec((b_tile, hp), lambda bt, tb: (bt, 0)),   # C_last
            ],
            scratch_shapes=[
                pltpu.VMEM((b_tile, hp), jnp.float32),                       # cell
                pltpu.VMEM((t_block, b_tile, n_gates * hp), jnp.float32),    # gates
            ],
        ),
        compiler_params=pltpu.CompilerParams(
            # time axis must stay sequential ("arbitrary"); batch tiles are
            # independent and may be sharded across cores.
            dimension_semantics=("parallel", "arbitrary"),
            vmem_limit_bytes=vmem_limit),
    )(src_p, w_p, b_p, h0_p)

    H = H_pad[:seq_len, :batch, :hidden_size]
    C_last = C_pad[:batch, :hidden_size][None]
    return H, C_last


def qrnn_reference(X, W, b, hidden=None, *, window=1, output_gate=True,
                   zoneout=0.0, prevX=None, matmul_dtype=None):
    """Pure-JAX reference replicating the PyTorch forward (eval mode).
    matmul_dtype lets us mimic the kernel's bf16 MXU operands for tight checks."""
    seq_len, batch, _ = X.shape
    n_gates = 3 if output_gate else 2
    hidden_size = W.shape[1] // n_gates
    if window == 1:
        source = X
    else:
        xm1_first = prevX if prevX is not None else X[:1] * 0
        Xm1 = jnp.concatenate([xm1_first, X[:-1]], 0) if seq_len > 1 else xm1_first
        source = jnp.concatenate([X, Xm1], 2)
    if matmul_dtype is not None:
        Y = jnp.dot(source.astype(matmul_dtype), W.astype(matmul_dtype),
                    preferred_element_type=jnp.float32) + b
    else:
        Y = source @ W + b
    Z = jnp.tanh(Y[..., :hidden_size])
    F = jax.nn.sigmoid(Y[..., hidden_size:2 * hidden_size])
    if zoneout:
        F = F * (1.0 - zoneout)
    if hidden is None:
        hidden = jnp.zeros((batch, hidden_size), X.dtype)

    def step(c_prev, fz):
        f, z = fz
        c = f * z + (1.0 - f) * c_prev
        return c, c

    _, C = jax.lax.scan(step, hidden.astype(jnp.float32), (F, Z))
    if output_gate:
        O = jax.nn.sigmoid(Y[..., 2 * hidden_size:3 * hidden_size])
        H = O * C
    else:
        H = C
    return H.astype(X.dtype), C[-1:].astype(X.dtype)


def _run_case(name, key, *, seq_len, batch, input_size, hidden_size, window,
              output_gate, zoneout, use_hidden, t_block):
    n_gates = 3 if output_gate else 2
    kx, kh, kw, kb = jax.random.split(key, 4)
    X = jax.random.normal(kx, (seq_len, batch, input_size), dtype=jnp.float32)
    hidden0 = (jax.random.normal(kh, (batch, hidden_size), dtype=jnp.float32)
               if use_hidden else None)
    fan_in = window * input_size
    k = 1.0 / float(fan_in) ** 0.5
    # PyTorch nn.Linear weight is (out, in); kernel takes the transposed layout.
    W = jax.random.uniform(kw, (fan_in, n_gates * hidden_size),
                           minval=-k, maxval=k, dtype=jnp.float32)
    b = jax.random.uniform(kb, (n_gates * hidden_size,),
                           minval=-k, maxval=k, dtype=jnp.float32)

    H_out, C_last = qrnn_layer_forward(X, W, b, hidden0, window=window,
                                       output_gate=output_gate, zoneout=zoneout,
                                       t_block=t_block)
    jax.block_until_ready((H_out, C_last))

    assert H_out.shape == (seq_len, batch, hidden_size), name
    assert C_last.shape == (1, batch, hidden_size), name

    # Tight check against a bf16-matmul-consistent reference (same math as MXU).
    H_bf, C_bf = qrnn_reference(X, W, b, hidden0, window=window,
                                output_gate=output_gate, zoneout=zoneout,
                                matmul_dtype=jnp.bfloat16)
    assert jnp.allclose(H_out, H_bf, atol=5e-3, rtol=5e-3), name
    assert jnp.allclose(C_last, C_bf, atol=5e-3, rtol=5e-3), name

    # Loose sanity check against the exact f32 PyTorch-equivalent reference.
    H_f32, C_f32 = qrnn_reference(X, W, b, hidden0, window=window,
                                  output_gate=output_gate, zoneout=zoneout)
    assert jnp.allclose(H_out, H_f32, atol=1e-1, rtol=1e-1), name
    assert jnp.allclose(C_last, C_f32, atol=1e-1, rtol=1e-1), name
    return True


if __name__ == "__main__":
    key = jax.random.PRNGKey(0)
    k1, k2 = jax.random.split(key)

    ok = True
    # QRNN-fo, window=1: exercises batch tiling (2 tiles), 3 time blocks,
    # seq padding + masking, hidden/K padding to 128.
    ok &= _run_case("qrnn_fo_w1", k1, seq_len=10, batch=16, input_size=32,
                    hidden_size=32, window=1, output_gate=True, zoneout=0.0,
                    use_hidden=True, t_block=4)
    # QRNN-f, window=2, eval-mode zoneout, ragged/odd sizes everywhere.
    ok &= _run_case("qrnn_f_w2_zoneout", k2, seq_len=5, batch=3, input_size=20,
                    hidden_size=24, window=2, output_gate=False, zoneout=0.1,
                    use_hidden=False, t_block=3)

    if ok:
        print("KERNEL_OK")
</pallas_src>

<mosaic_0001>
module attributes {stable_mosaic.version = 11 : i64} {
  func.func @_qrnn_kernel(%arg0: i32, %arg1: i32, %arg2: memref<1x32x128xbf16, #tpu.memory_space<vmem>>, %arg3: memref<128x384xbf16, #tpu.memory_space<vmem>>, %arg4: memref<1x384xf32, #tpu.memory_space<vmem>>, %arg5: memref<8x128xf32, #tpu.memory_space<vmem>>, %arg6: memref<4x8x128xf32, #tpu.memory_space<vmem>>, %arg7: memref<8x128xf32, #tpu.memory_space<vmem>>, %arg8: memref<8x128xf32, #tpu.memory_space<vmem>>, %arg9: memref<4x8x384xf32, #tpu.memory_space<vmem>>) attributes {dimension_semantics = [#tpu.dimension_semantics<parallel>, #tpu.dimension_semantics<arbitrary>], iteration_bounds = array<i64: 2, 3>, scalar_prefetch = 0 : i64, scratch_operands = 2 : i64, tpu.core_type = #tpu.core_type<tc>, window_params = [{transform_indices = @transform_0, window_bounds = array<i64: 1, 32, 128>}, {pipeline_mode = #tpu.pipeline_mode<synchronous>, transform_indices = @transform_1, window_bounds = array<i64: 128, 384>}, {pipeline_mode = #tpu.pipeline_mode<synchronous>, transform_indices = @transform_2, window_bounds = array<i64: 1, 384>}, {transform_indices = @transform_3, window_bounds = array<i64: 8, 128>}, {transform_indices = @transform_4, window_bounds = array<i64: 4, 8, 128>}, {transform_indices = @transform_5, window_bounds = array<i64: 8, 128>}]} {
    %c0_i32 = arith.constant 0 : i32
    %0 = arith.cmpi eq, %arg1, %c0_i32 : i32
    %1 = arith.extui %0 : i1 to i32
    %c0_i32_0 = arith.constant 0 : i32
    %2 = arith.cmpi ne, %1, %c0_i32_0 : i32
    scf.if %2 {
      %c0_46 = arith.constant 0 : index
      %c0_47 = arith.constant 0 : index
      %107 = vector.load %arg5[%c0_46, %c0_47] : memref<8x128xf32, #tpu.memory_space<vmem>>, vector<8x128xf32>
      %c0_48 = arith.constant 0 : index
      %c0_49 = arith.constant 0 : index
      %108 = vector.load %arg8[%c0_48, %c0_49] : memref<8x128xf32, #tpu.memory_space<vmem>>, vector<8x128xf32>
      tpu.vector_store %arg8[%c0_48, %c0_49], %107 {strides = array<i32>} : memref<8x128xf32, #tpu.memory_space<vmem>>, vector<8x128xf32>,
    } else {
    }
    %c0 = arith.constant 0 : index
    %c0_1 = arith.constant 0 : index
    %c0_2 = arith.constant 0 : index
    %3 = vector.load %arg2[%c0, %c0_1, %c0_2] : memref<1x32x128xbf16, #tpu.memory_space<vmem>>, vector<1x32x128xbf16>
    %4 = vector.shape_cast %3 : vector<1x32x128xbf16> to vector<32x128xbf16>
    %c0_3 = arith.constant 0 : index
    %c0_4 = arith.constant 0 : index
    %5 = vector.load %arg3[%c0_3, %c0_4] : memref<128x384xbf16, #tpu.memory_space<vmem>>, vector<128x384xbf16>
    %cst = arith.constant dense<0.000000e+00> : vector<32x384xf32>
    %6 = tpu.matmul %4, %5, %cst {dimension_numbers = #tpu.dot_dimension_numbers<[1], [0], [0], [1], [0, 0, 1, 1], [], []>} : vector<32x128xbf16>, vector<128x384xbf16>, vector<32x384xf32> -> vector<32x384xf32>
    %c0_5 = arith.constant 0 : index
    %c0_6 = arith.constant 0 : index
    %7 = vector.load %arg4[%c0_5, %c0_6] : memref<1x384xf32, #tpu.memory_space<vmem>>, vector<1x384xf32>
    %8 = vector.broadcast %7 : vector<1x384xf32> to vector<32x384xf32>
    %9 = arith.addf %6, %8 : vector<32x384xf32>
    %10 = vector.extract_strided_slice %9 {offsets = [0, 0], sizes = [32, 128], strides = [1, 1]} : vector<32x384xf32> to vector<32x128xf32>
    %11 = math.tanh %10 : vector<32x128xf32>
    %12 = vector.shape_cast %11 : vector<32x128xf32> to vector<4x8x128xf32>
    %c0_7 = arith.constant 0 : index
    %c0_8 = arith.constant 0 : index
    %c0_9 = arith.constant 0 : index
    %13 = vector.load %arg9[%c0_7, %c0_8, %c0_9] : memref<4x8x384xf32, #tpu.memory_space<vmem>>, vector<4x8x128xf32>
    tpu.vector_store %arg9[%c0_7, %c0_8, %c0_9], %12 {strides = array<i32>} : memref<4x8x384xf32, #tpu.memory_space<vmem>>, vector<4x8x128xf32>,
    %14 = vector.extract_strided_slice %9 {offsets = [0, 128], sizes = [32, 128], strides = [1, 1]} : vector<32x384xf32> to vector<32x128xf32>
    %15 = arith.negf %14 : vector<32x128xf32>
    %16 = math.exp %15 : vector<32x128xf32>
    %cst_10 = arith.constant 1.000000e+00 : f32
    %17 = vector.broadcast %cst_10 : f32 to vector<32x128xf32>
    %18 = arith.addf %17, %16 : vector<32x128xf32>
    %19 = arith.divf %17, %18 : vector<32x128xf32>
    %20 = vector.shape_cast %19 : vector<32x128xf32> to vector<4x8x128xf32>
    %c0_11 = arith.constant 0 : index
    %c0_12 = arith.constant 0 : index
    %c128 = arith.constant 128 : index
    %21 = vector.load %arg9[%c0_11, %c0_12, %c128] : memref<4x8x384xf32, #tpu.memory_space<vmem>>, vector<4x8x128xf32>
    tpu.vector_store %arg9[%c0_11, %c0_12, %c128], %20 {strides = array<i32>} : memref<4x8x384xf32, #tpu.memory_space<vmem>>, vector<4x8x128xf32>,
    %22 = vector.extract_strided_slice %9 {offsets = [0, 256], sizes = [32, 128], strides = [1, 1]} : vector<32x384xf32> to vector<32x128xf32>
    %23 = arith.negf %22 : vector<32x128xf32>
    %24 = math.exp %23 : vector<32x128xf32>
    %cst_13 = arith.constant 1.000000e+00 : f32
    %25 = vector.broadcast %cst_13 : f32 to vector<32x128xf32>
    %26 = arith.addf %25, %24 : vector<32x128xf32>
    %27 = arith.divf %25, %26 : vector<32x128xf32>
    %28 = vector.shape_cast %27 : vector<32x128xf32> to vector<4x8x128xf32>
    %c0_14 = arith.constant 0 : index
    %c0_15 = arith.constant 0 : index
    %c256 = arith.constant 256 : index
    %29 = vector.load %arg9[%c0_14, %c0_15, %c256] : memref<4x8x384xf32, #tpu.memory_space<vmem>>, vector<4x8x128xf32>
    tpu.vector_store %arg9[%c0_14, %c0_15, %c256], %28 {strides = array<i32>} : memref<4x8x384xf32, #tpu.memory_space<vmem>>, vector<4x8x128xf32>,
    %c0_16 = arith.constant 0 : index
    %c0_17 = arith.constant 0 : index
    %30 = vector.load %arg8[%c0_16, %c0_17] : memref<8x128xf32, #tpu.memory_space<vmem>>, vector<8x128xf32>
    %c0_i32_18 = arith.constant 0 : i32
    %31 = arith.index_cast %c0_i32_18 : i32 to index
    %c0_19 = arith.constant 0 : index
    %c0_20 = arith.constant 0 : index
    %32 = vector.load %arg9[%31, %c0_19, %c0_20] : memref<4x8x384xf32, #tpu.memory_space<vmem>>, vector<1x8x384xf32>
    %33 = vector.shape_cast %32 : vector<1x8x384xf32> to vector<8x384xf32>
    %34 = vector.extract_strided_slice %33 {offsets = [0, 0], sizes = [8, 128], strides = [1, 1]} : vector<8x384xf32> to vector<8x128xf32>
    %35 = vector.extract_strided_slice %33 {offsets = [0, 128], sizes = [8, 128], strides = [1, 1]} : vector<8x384xf32> to vector<8x128xf32>
    %36 = arith.subf %34, %30 : vector<8x128xf32>
    %37 = arith.mulf %35, %36 : vector<8x128xf32>
    %38 = arith.addf %30, %37 : vector<8x128xf32>
    %c4_i32 = arith.constant 4 : i32
    %39 = arith.muli %arg1, %c4_i32 : i32
    %40 = arith.addi %39, %c0_i32_18 : i32
    %c10_i32 = arith.constant 10 : i32
    %41 = arith.cmpi slt, %40, %c10_i32 : i32
    %42 = arith.select %41, %38, %30 : vector<8x128xf32>
    %43 = vector.extract_strided_slice %33 {offsets = [0, 256], sizes = [8, 128], strides = [1, 1]} : vector<8x384xf32> to vector<8x128xf32>
    %44 = arith.mulf %43, %42 : vector<8x128xf32>
    %45 = arith.index_cast %c0_i32_18 : i32 to index
    %c0_21 = arith.constant 0 : index
    %c0_22 = arith.constant 0 : index
    %46 = vector.load %arg6[%45, %c0_21, %c0_22] : memref<4x8x128xf32, #tpu.memory_space<vmem>>, vector<1x8x128xf32>
    %47 = vector.shape_cast %46 : vector<1x8x128xf32> to vector<8x128xf32>
    %48 = vector.shape_cast %44 : vector<8x128xf32> to vector<1x8x128xf32>
    tpu.vector_store %arg6[%45, %c0_21, %c0_22], %48 {strides = array<i32>} : memref<4x8x128xf32, #tpu.memory_space<vmem>>, vector<1x8x128xf32>,
    %c1_i32 = arith.constant 1 : i32
    %49 = arith.index_cast %c1_i32 : i32 to index
    %c0_23 = arith.constant 0 : index
    %c0_24 = arith.constant 0 : index
    %50 = vector.load %arg9[%49, %c0_23, %c0_24] : memref<4x8x384xf32, #tpu.memory_space<vmem>>, vector<1x8x384xf32>
    %51 = vector.shape_cast %50 : vector<1x8x384xf32> to vector<8x384xf32>
    %52 = vector.extract_strided_slice %51 {offsets = [0, 0], sizes = [8, 128], strides = [1, 1]} : vector<8x384xf32> to vector<8x128xf32>
    %53 = vector.extract_strided_slice %51 {offsets = [0, 128], sizes = [8, 128], strides = [1, 1]} : vector<8x384xf32> to vector<8x128xf32>
    %54 = arith.subf %52, %42 : vector<8x128xf32>
    %55 = arith.mulf %53, %54 : vector<8x128xf32>
    %56 = arith.addf %42, %55 : vector<8x128xf32>
    %c4_i32_25 = arith.constant 4 : i32
    %57 = arith.muli %arg1, %c4_i32_25 : i32
    %58 = arith.addi %57, %c1_i32 : i32
    %c10_i32_26 = arith.constant 10 : i32
    %59 = arith.cmpi slt, %58, %c10_i32_26 : i32
    %60 = arith.select %59, %56, %42 : vector<8x128xf32>
    %61 = vector.extract_strided_slice %51 {offsets = [0, 256], sizes = [8, 128], strides = [1, 1]} : vector<8x384xf32> to vector<8x128xf32>
    %62 = arith.mulf %61, %60 : vector<8x128xf32>
    %63 = arith.index_cast %c1_i32 : i32 to index
    %c0_27 = arith.constant 0 : index
    %c0_28 = arith.constant 0 : index
    %64 = vector.load %arg6[%63, %c0_27, %c0_28] : memref<4x8x128xf32, #tpu.memory_space<vmem>>, vector<1x8x128xf32>
    %65 = vector.shape_cast %64 : vector<1x8x128xf32> to vector<8x128xf32>
    %66 = vector.shape_cast %62 : vector<8x128xf32> to vector<1x8x128xf32>
    tpu.vector_store %arg6[%63, %c0_27, %c0_28], %66 {strides = array<i32>} : memref<4x8x128xf32, #tpu.memory_space<vmem>>, vector<1x8x128xf32>,
    %c2_i32 = arith.constant 2 : i32
    %67 = arith.index_cast %c2_i32 : i32 to index
    %c0_29 = arith.constant 0 : index
    %c0_30 = arith.constant 0 : index
    %68 = vector.load %arg9[%67, %c0_29, %c0_30] : memref<4x8x384xf32, #tpu.memory_space<vmem>>, vector<1x8x384xf32>
    %69 = vector.shape_cast %68 : vector<1x8x384xf32> to vector<8x384xf32>
    %70 = vector.extract_strided_slice %69 {offsets = [0, 0], sizes = [8, 128], strides = [1, 1]} : vector<8x384xf32> to vector<8x128xf32>
    %71 = vector.extract_strided_slice %69 {offsets = [0, 128], sizes = [8, 128], strides = [1, 1]} : vector<8x384xf32> to vector<8x128xf32>
    %72 = arith.subf %70, %60 : vector<8x128xf32>
    %73 = arith.mulf %71, %72 : vector<8x128xf32>
    %74 = arith.addf %60, %73 : vector<8x128xf32>
    %c4_i32_31 = arith.constant 4 : i32
    %75 = arith.muli %arg1, %c4_i32_31 : i32
    %76 = arith.addi %75, %c2_i32 : i32
    %c10_i32_32 = arith.constant 10 : i32
    %77 = arith.cmpi slt, %76, %c10_i32_32 : i32
    %78 = arith.select %77, %74, %60 : vector<8x128xf32>
    %79 = vector.extract_strided_slice %69 {offsets = [0, 256], sizes = [8, 128], strides = [1, 1]} : vector<8x384xf32> to vector<8x128xf32>
    %80 = arith.mulf %79, %78 : vector<8x128xf32>
    %81 = arith.index_cast %c2_i32 : i32 to index
    %c0_33 = arith.constant 0 : index
    %c0_34 = arith.constant 0 : index
    %82 = vector.load %arg6[%81, %c0_33, %c0_34] : memref<4x8x128xf32, #tpu.memory_space<vmem>>, vector<1x8x128xf32>
    %83 = vector.shape_cast %82 : vector<1x8x128xf32> to vector<8x128xf32>
    %84 = vector.shape_cast %80 : vector<8x128xf32> to vector<1x8x128xf32>
    tpu.vector_store %arg6[%81, %c0_33, %c0_34], %84 {strides = array<i32>} : memref<4x8x128xf32, #tpu.memory_space<vmem>>, vector<1x8x128xf32>,
    %c3_i32 = arith.constant 3 : i32
    %85 = arith.index_cast %c3_i32 : i32 to index
    %c0_35 = arith.constant 0 : index
    %c0_36 = arith.constant 0 : index
    %86 = vector.load %arg9[%85, %c0_35, %c0_36] : memref<4x8x384xf32, #tpu.memory_space<vmem>>, vector<1x8x384xf32>
    %87 = vector.shape_cast %86 : vector<1x8x384xf32> to vector<8x384xf32>
    %88 = vector.extract_strided_slice %87 {offsets = [0, 0], sizes = [8, 128], strides = [1, 1]} : vector<8x384xf32> to vector<8x128xf32>
    %89 = vector.extract_strided_slice %87 {offsets = [0, 128], sizes = [8, 128], strides = [1, 1]} : vector<8x384xf32> to vector<8x128xf32>
    %90 = arith.subf %88, %78 : vector<8x128xf32>
    %91 = arith.mulf %89, %90 : vector<8x128xf32>
    %92 = arith.addf %78, %91 : vector<8x128xf32>
    %c4_i32_37 = arith.constant 4 : i32
    %93 = arith.muli %arg1, %c4_i32_37 : i32
    %94 = arith.addi %93, %c3_i32 : i32
    %c10_i32_38 = arith.constant 10 : i32
    %95 = arith.cmpi slt, %94, %c10_i32_38 : i32
    %96 = arith.select %95, %92, %78 : vector<8x128xf32>
    %97 = vector.extract_strided_slice %87 {offsets = [0, 256], sizes = [8, 128], strides = [1, 1]} : vector<8x384xf32> to vector<8x128xf32>
    %98 = arith.mulf %97, %96 : vector<8x128xf32>
    %99 = arith.index_cast %c3_i32 : i32 to index
    %c0_39 = arith.constant 0 : index
    %c0_40 = arith.constant 0 : index
    %100 = vector.load %arg6[%99, %c0_39, %c0_40] : memref<4x8x128xf32, #tpu.memory_space<vmem>>, vector<1x8x128xf32>
    %101 = vector.shape_cast %100 : vector<1x8x128xf32> to vector<8x128xf32>
    %102 = vector.shape_cast %98 : vector<8x128xf32> to vector<1x8x128xf32>
    tpu.vector_store %arg6[%99, %c0_39, %c0_40], %102 {strides = array<i32>} : memref<4x8x128xf32, #tpu.memory_space<vmem>>, vector<1x8x128xf32>,
    %c4_i32_41 = arith.constant 4 : i32
    %c0_42 = arith.constant 0 : index
    %c0_43 = arith.constant 0 : index
    %103 = vector.load %arg8[%c0_42, %c0_43] : memref<8x128xf32, #tpu.memory_space<vmem>>, vector<8x128xf32>
    tpu.vector_store %arg8[%c0_42, %c0_43], %96 {strides = array<i32>} : memref<8x128xf32, #tpu.memory_space<vmem>>, vector<8x128xf32>,
    %c2_i32_44 = arith.constant 2 : i32
    %104 = arith.cmpi eq, %arg1, %c2_i32_44 : i32
    %105 = arith.extui %104 : i1 to i32
    %c0_i32_45 = arith.constant 0 : i32
    %106 = arith.cmpi ne, %105, %c0_i32_45 : i32
    scf.if %106 {
      %c0_46 = arith.constant 0 : index
      %c0_47 = arith.constant 0 : index
      %107 = vector.load %arg7[%c0_46, %c0_47] : memref<8x128xf32, #tpu.memory_space<vmem>>, vector<8x128xf32>
      tpu.vector_store %arg7[%c0_46, %c0_47], %96 {strides = array<i32>} : memref<8x128xf32, #tpu.memory_space<vmem>>, vector<8x128xf32>,
    } else {
    }
    return
  }
  func.func @transform_0(%arg0: i32, %arg1: i32) -> (i32, i32, i32) {
    %c0_i32 = arith.constant 0 : i32
    %c0_i32_0 = arith.constant 0 : i32
    return %arg0, %arg1, %c0_i32 : i32, i32, i32
  }
  func.func @transform_1(%arg0: i32, %arg1: i32) -> (i32, i32) {
    %c0_i32 = arith.constant 0 : i32
    %c0_i32_0 = arith.constant 0 : i32
    %c0_i32_1 = arith.constant 0 : i32
    return %c0_i32, %c0_i32_0 : i32, i32
  }
  func.func @transform_2(%arg0: i32, %arg1: i32) -> (i32, i32) {
    %c0_i32 = arith.constant 0 : i32
    %c0_i32_0 = arith.constant 0 : i32
    %c0_i32_1 = arith.constant 0 : i32
    return %c0_i32, %c0_i32_0 : i32, i32
  }
  func.func @transform_3(%arg0: i32, %arg1: i32) -> (i32, i32) {
    %c0_i32 = arith.constant 0 : i32
    %c0_i32_0 = arith.constant 0 : i32
    return %arg0, %c0_i32 : i32, i32
  }
  func.func @transform_4(%arg0: i32, %arg1: i32) -> (i32, i32, i32) {
    %c0_i32 = arith.constant 0 : i32
    %c0_i32_0 = arith.constant 0 : i32
    return %arg1, %arg0, %c0_i32 : i32, i32, i32
  }
  func.func @transform_5(%arg0: i32, %arg1: i32) -> (i32, i32) {
    %c0_i32 = arith.constant 0 : i32
    %c0_i32_0 = arith.constant 0 : i32
    return %arg0, %c0_i32 : i32, i32
  }
}

</mosaic_0001>

<bundles_post_ra>
// kernel: tpu_custom_call.1
= control target key start
LH: loop header
LB: loop body
LE: loop exit
PB: predicated region body
PF: predicated region fallthrough
CT: control target
= control target key end

     0   :  { %s2116_s0 = inlined_call_operand.hbm [shape: bf16[2,96,128], index: 0, kind: input, shape index: {}]   ;;  %s2117_s1 = inlined_call_operand.hbm [shape: bf16[128,384], index: 1, kind: input, shape index: {}]   ;;  %s2118_s2 = inlined_call_operand.hbm [shape: f32[1,384], index: 2, kind: input, shape index: {}]   ;;  %s2119_s3 = inlined_call_operand.hbm [shape: f32[16,128], index: 3, kind: input, shape index: {}]   ;;  %s2120_s4 = inlined_call_operand.hbm [shape: f32[12,16,128], index: 4, kind: output, shape index: {0}]   ;;  %s2121_s5 = inlined_call_operand.hbm [shape: f32[16,128], index: 5, kind: output, shape index: {1}]  }
   0x1   :  { %2132 = sst [smem:[#allocation27_spill]] %s2116_s0 }
   0x2   :  { %2133 = sst [smem:[#allocation28_spill]] %s2117_s1 }
   0x3   :  { %2134 = sst [smem:[#allocation29_spill]] %s2118_s2 }
   0x4   :  { %2135 = sst [smem:[#allocation30_spill]] %s2119_s3 }
   0x5   :  { %2136 = sst [smem:[#allocation31_spill]] %s2120_s4 }
   0x6   :  { %2137 = sst [smem:[#allocation32_spill]] %s2121_s5 }
   0x7   :  { %11 = vsyncpa [#allocation5], 0 }
   0x8   :  { %13 = vsyncpa [#allocation5 + $0x1], 0 }
   0x9   :  { %14 = vsyncpa [#allocation8], 0 }
   0xa   :  { %15 = vsyncpa [#allocation11], 0 }
   0xb   :  { %17 = vsyncpa [#allocation11 + $0x1], 0 }
   0xc   :  { %18 = vsyncpa [#allocation6], 0 }
   0xd   :  { %20 = vsyncpa [#allocation6 + $0x1], 0 }
   0xe   :  { %21 = vsyncpa [#allocation14], 0 }
   0xf   :  { %23 = vsyncpa [#allocation14 + $0x1], 0  ;;  %s1714_s18 = smov 0   ;;  %s1716_s19 = smov 0  }
  0x10   :  { %s1718_s20 = smov 0   ;;  %s1720_s21 = smov 0  }
  0x11   :  { %s1722_s22 = smov 0   ;;  %s1724_s23 = smov 0  }
  0x12   :  { %s1726_s24 = smov 0   ;;  %s1728_s25 = smov 0  }
  0x13   :  { %s1730_s26 = smov 0   ;;  %s1732_s27 = smov 0  }
  0x14   :  { %s1734_s28 = smov 0  }
  0x15 LB: > { %2138 = sst [smem:[#allocation20_spill]] %s1649_s22  ;;  %s2122_s29 = sadd.s32 4294967295, %s1673_s28   ;;  %s1673_s28 = sphi %s1734_s28, %s29_s28   ;;  %s1669_s27 = sphi %s1732_s27, %s2180_s27   ;;  %s1665_s26 = sphi %s1730_s26, %s2184_s26   ;;  %s1661_s25 = sphi %s1728_s25, %s2178_s25   ;;  %s1657_s24 = sphi %s1726_s24, %s2177_s24   ;;  %s1653_s23 = sphi %s1724_s23, %s2176_s23   ;;  %s1649_s22 = sphi %s1722_s22, %s2175_s22   ;;  %s1645_s21 = sphi %s1720_s21, %s2174_s21   ;;  %s1641_s20 = sphi %s1718_s20, %s2183_s20   ;;  %s1637_s19 = sphi %s1716_s19, %s2182_s19   ;;  %s1633_s18 = sphi %s1714_s18, %s2181_s18  }
  0x16   : > { %2139 = sst [smem:[#allocation21_spill]] %s1653_s23  ;;  %p1033_p0 = scmp.ge.s32.totalorder %s1673_s28, 1 }
  0x17   : > { %2140 = sst [smem:[#allocation22_spill]] %s1665_s26  ;;  %p1773_p1 = scmp.eq.s32.totalorder %s2122_s29, 0 }
  0x18   : > { %2141 = sst [smem:[#allocation23_spill]] %s1669_s27  ;;  %p196_p2 = scmp.lt.s32.totalorder %s1673_s28, 7 }
  0x19   : > { %s2143_s1 = sld [smem:[#allocation28_spill]]  ;;  %s1675_s10 = smov [#allocation7]  }
  0x1a   : > { %p1781_p3 = pnand %p1033_p0, %p196_p2  ;;  %s209_s11 = sshll.u32 %s1675_s10, 4  ;;  %s210_s11 = int_to_ptr.vmem [resolvable:$true] %s209_s11 }
  0x1b   : > { %s2145_s2 = sld [smem:[#allocation29_spill]]  ;;  %s1676_s15 = smov 192  }
  0x1c   : > { %p1227_p4 = pneg %p1781_p3  ;;  %s1677_s16 = smov 12  }
  0x1d   : > { %s1678_s17 = smov [#allocation9]   ;;  %s38_s7 = sadd.s32 1, %s1665_s26 }
  0x1e   : > { %p1228_p5 = pnand %p1227_p4, %p1773_p1  ;;  %s224_s6 = sshll.u32 %s1678_s17, 4  ;;  %s225_s6 = int_to_ptr.vmem [resolvable:$true] %s224_s6 }
  0x1f   : > { %s207_s8 = sshll.u32 %s2143_s1, 4  ;;  %s41_s10 = sadd.s32 1, %s1669_s27  ;;  %s208_s8 = int_to_ptr.hbm [resolvable:$true] %s207_s8 }
  0x20   : > { %1230 = dma.hbm_to_vmem [thread:$0]  (!%p1228_p5), %s208_s8, 3072, %s210_s11, [#allocation8], %s1676_s15, %s1676_s15, %s1677_s16  }
  0x21   : > { %s222_s14 = sshll.u32 %s2145_s2, 4  ;;  %p39_p6 = scmp.ge.s32.totalorder %s38_s7, 3  ;;  %s223_s14 = int_to_ptr.hbm [resolvable:$true] %s222_s14 }
  0x22   : > { %1233 = dma.hbm_to_vmem [thread:$0]  (!%p1228_p5), %s223_s14, 48, %s225_s6, [#allocation8]  }
  0x23   : > { %s50_s12 = sadd.s32 1, %s1653_s23  ;;  %p57_p7 = scmp.ne.s32.totalorder %s1653_s23, %s1649_s22 }
  0x24   : > { %p58_p8 = scmp.eq.s32.totalorder %s1673_s28, 0  ;;  %s2186_s7 = smov (%p39_p6, %s38_s7), 0 }
  0x25   : > { %2146 = sst [smem:[#allocation24_spill]] %s2186_s7  ;;  %s2188_s10 = smov (!%p39_p6, %s41_s10), %s1669_s27 }
  0x26   : > { %s46_s8 = ssub.s32 %s1665_s26, %s2186_s7  ;;  %p1808_p9 = por %p58_p8, %p57_p7 }
  0x27   : > { %p43_p10 = scmp.ge.s32.totalorder %s2188_s10, 2  ;;  %p63_p11 = scmp.ne.s32.totalorder %s1649_s22, %s1645_s21 }
  0x28   : > { %p2127_p12 = scmp.lt.s32.totalorder %s1673_s28, 6  ;;  %s235_s13 = sand.u32 1, %s1653_s23  }
  0x29   : > { %s2190_s10 = smov (%p43_p10, %s2188_s10), 0  ;;  %p1823_p13 = por %p1773_p1, %p63_p11 }
  0x2a   : > { %2148 = sst [smem:[#allocation25_spill]] %s2190_s10  ;;  %s45_s15 = ssub.s32 %s1669_s27, %s2190_s10 }
  0x2b   : > { %s2149_s14 = scalar_select %p1823_p13, 1, 0 }
  0x2c   : > { %s1037_s16 = sshll.u32 %s235_s13, 4  ;;  %s47_s17 = sor.u32 %s46_s8, %s45_s15 }
  0x2d   : > { %p48_p0 = scmp.eq.s32.totalorder %s47_s17, 0  ;;  %s1038_s6 = sshll.u32 %s1665_s26, 2 }
  0x2e   : > { %s1210_s29 = smul.u32 12, %s1669_s27  ;;  %s239_s1 = scalar_lea.vmem [#allocation4], %s1037_s16 }
  0x2f   : > { %s249_s2 = sshll.u32 %s239_s1, 4  ;;  %p1235_p2 = pnand %p2127_p12, %p1808_p9  ;;  %s250_s2 = int_to_ptr.vmem [resolvable:$true] %s249_s2 }
  0x30   : > { %s1832_s7 = scalar_select %p48_p0, %s1653_s23, %s50_s12  }
  0x31   : > { %s244_s5 = sadd.s32 %s1210_s29, %s1038_s6  ;;  %s2151_s0 = sld [smem:[#allocation27_spill]] }
  0x32   : > { %2150 = sst [smem:[#allocation26_spill]] %s1832_s7  ;;  %s1039_s10 = sshll.u32 %s244_s5, 2 }
  0x33   : > { %s236_s29 = scalar_lea.sflag [#allocation5], %s235_s13  ;;  %s1679_s12 = smov 64  }
  0x34   : > { %s1680_s6 = smov 4   ;;  %s1032_s5 = sadd.s32 4294967294, %s1673_s28  }
  0x35   : > { %p116_p4 = scmp.eq.s32.totalorder %s45_s15, 0  ;;  %s118_s11 = sadd.s32 1, %s1641_s20 }
  0x36   : > { %p125_p5 = scmp.ne.s32.totalorder %s1641_s20, %s1637_s19  ;;  %p131_p9 = scmp.ne.s32.totalorder %s1637_s19, %s1633_s18 }
  0x37   : > { %s246_s16 = scalar_lea.hbm %s2151_s0, %s1039_s10  ;;  %s2153_s8 = sadd.s32 4294967295, %s1673_s28  }
  0x38   : > { %s247_s1 = sshll.u32 %s246_s16, 4  ;;  %p1850_p6 = por %p125_p5, %p58_p8  ;;  %s248_s1 = int_to_ptr.hbm [resolvable:$true] %s247_s1 }
  0x39   : > { %1237 = dma.hbm_to_vmem [thread:$0]  (!%p1235_p2), %s248_s1, 256, %s250_s2, %s236_s29, %s1679_s12, %s1679_s12, %s1680_s6  }
  0x3a   : > { %s1846_s26 = scalar_select %p116_p4, %s1641_s20, %s118_s11  }
  0x3b   : > { %p157_p10 = scmp.eq.s32.totalorder %s2153_s8, 5  ;;  %p163_p0 = scmp.eq.s32.totalorder %s1032_s5, 5 }
  0x3c   : > { %p1860_p2 = por %p131_p9, %p1773_p1  ;;  %s259_s13 = sand.u32 1, %s1641_s20  }
  0x3d   : > { %p1868_p4 = por %p157_p10, %p57_p7  ;;  %p1875_p8 = por %p163_p0, %p63_p11 }
  0x3e   : > { %p1879_p12 = por %p157_p10, %p125_p5  ;;  %p1883_p13 = por %p163_p0, %p131_p9 }
  0x3f   : > { %s1040_s29 = sshll.u32 %s259_s13, 3  ;;  %s1041_s12 = sshll.u32 %s1669_s27, 3 }
  0x40   : > { %s2159_s3 = sld [smem:[#allocation30_spill]]  ;;  %s263_s8 = scalar_lea.vmem [#allocation10], %s1040_s29 }
  0x41   : > { %s271_s0 = sshll.u32 %s263_s8, 4  ;;  %p2160_p7 = scmp.lt.s32.totalorder %s1673_s28, 6  ;;  %s272_s0 = int_to_ptr.vmem [resolvable:$true] %s271_s0 }
  0x42   : > { %s260_s23 = scalar_lea.sflag [#allocation11], %s259_s13  ;;  %s1898_s27 = sand.u32 (!%p1781_p3), 1, %s1649_s22  }
  0x43   : > { %p1238_p11 = pnand %p2160_p7, %p1850_p6  ;;  %s283_s29 = scalar_lea.sflag (!%p1781_p3), [#allocation5], %s1898_s27 }
  0x44   : > { %280 = sbr.rel (%p1781_p3) target bundleno = 363 (0x16b), region = 36  ;;  %p2161_p5 = scmp.ne.s32.totalorder (!%p1781_p3), %s2149_s14, 0 }
  0x46   : > { %s267_s11 = scalar_lea.hbm %s2159_s3, %s1041_s12  ;;  %s1043_s12 = sshll.u32 (!%p1781_p3), %s1898_s27, 4 }
  0x47   : > { %s269_s7 = sshll.u32 %s267_s11, 4  ;;  %s1902_s6 = scalar_lea.vmem (!%p1781_p3), [#allocation4], %s1043_s12  ;;  %s270_s7 = int_to_ptr.hbm [resolvable:$true] %s269_s7 }
  0x48   : > { %1240 = dma.hbm_to_vmem [thread:$0]  (!%p1238_p11), %s270_s7, 128, %s272_s0, %s260_s23  }
  0x49   : > { %1612 = dma.done.wait (%p2161_p5), %s283_s29, 256  }
  0x4a   : > { %1614 = vsyncadd (%p2161_p5), %s283_s29, 4294967040 }
  0x4b   : > { %1616 = dma.done.wait (%p1773_p1), [#allocation8], 3120  }
  0x4c   : > { %1618 = vsyncadd (%p1773_p1), [#allocation8], 4294964176  ;;  %s1913_s0 = sand.u32 1, %s1637_s19  }
  0x4d   : > { %s1046_s23 = sshll.u32 %s1913_s0, 3  ;;  %s303_s9 = scalar_lea.sflag [#allocation11], %s1913_s0 }
  0x4e   : > { %s306_s7 = scalar_lea.vmem [#allocation10], %s1046_s23 }
  0x4f   : > { %1620 = dma.done.wait (%p1860_p2), %s303_s9, 128  }
  0x50   : > { %1622 = vsyncadd (%p1860_p2), %s303_s9, 4294967168  ;;  %s1047_s14 = sshll.u32 %s1898_s27, 5  ;;  %s1924_s30 = scalar_lea.vmem [#allocation13], %s1046_s23 }
  0x51   : > { %s1922_s10 = scalar_lea.vmem [#allocation12], %s1047_s14  ;;  %p1049_p1 = scmp.ne.s32.totalorder %s1657_s24, 0 }
  0x53   : > { %349 = sbr.rel (%p1049_p1) target bundleno = 90 (0x5a), region = 56 }
  0x58   : > { %v350_v0 = vld [vmem:[%s306_s7] sm:$0xff] }
  0x59   : > { %351 = vst [vmem:[#allocation2] sm:$0xff] %v350_v0 }
  0x5a PF: > { %v1198_v1 = vld [vmem:[#allocation7 + $0xac] sm:$0xf]  ;;  %v1146_v2 = vld [vmem:[#allocation7 + $0xb4] sm:$0xf0]  ;;  %v1152_v3 = vld [vmem:[#allocation7 + $0xb0] sm:$0xf] }
  0x5b   : > { %v1149_v4 = vor.u32 %v1198_v1, %v1146_v2  ;;  %v1200_v5 = vld [vmem:[#allocation7 + $0xb8] sm:$0xf0]  ;;  %v1195_v6 = vld [vmem:[#allocation7 + $0x94] sm:$0xf]  ;;  %v1134_v7 = vld [vmem:[#allocation7 + $0x9c] sm:$0xf0] }
  0x5c   : > { %v1153_v8 = vor.u32 %v1200_v5, %v1152_v3  ;;  %v1140_v9 = vld [vmem:[#allocation7 + $0x98] sm:$0xf]  ;;  %v1197_v10 = vld [vmem:[#allocation7 + $0xa0] sm:$0xf0]  ;;  %v1137_v11 = vor.u32 %v1195_v6, %v1134_v7  ;;  %v1192_v13 = vld [vmem:[#allocation7 + $0x7c] sm:$0xf] }
  0x5d   : > { %555 = vmatpush.bf16.msra.mxu1 %v1149_v4  ;;  %v1141_v12 = vor.u32 %v1197_v10, %v1140_v9  ;;  %v1122_v14 = vld [vmem:[#allocation7 + $0x84] sm:$0xf0]  ;;  %v1128_v15 = vld [vmem:[#allocation7 + $0x80] sm:$0xf]  ;;  %v1194_v16 = vld [vmem:[#allocation7 + $0x88] sm:$0xf0] }
  0x5e   : > { %574 = vmatpush.bf16.msra.mxu2 %v1153_v8  ;;  %v1144_v17 = vld [vmem:[#allocation7 + $0xa8] sm:$0xf]  ;;  %v1199_v18 = vld [vmem:[#allocation7 + $0xb0] sm:$0xf0]  ;;  %v1125_v20 = vor.u32 %v1192_v13, %v1122_v14  ;;  %v1132_v21 = vld [vmem:[#allocation7 + $0x90] sm:$0xf]  ;;  %v1129_v23 = vor.u32 %v1194_v16, %v1128_v15 }
  0x5f   : > { %v1145_v19 = vor.u32 %v1199_v18, %v1144_v17  ;;  %v1196_v22 = vld [vmem:[#allocation7 + $0x98] sm:$0xf0]  ;;  %v1189_v24 = vld [vmem:[#allocation7 + $0x64] sm:$0xf]  ;;  %v1110_v25 = vld [vmem:[#allocation7 + $0x6c] sm:$0xf0] }
  0x60   : > { %v1116_v26 = vld [vmem:[#allocation7 + $0x68] sm:$0xf]  ;;  %v1133_v27 = vor.u32 %v1196_v22, %v1132_v21  ;;  %v1191_v28 = vld [vmem:[#allocation7 + $0x70] sm:$0xf0]  ;;  %v1120_v29 = vld [vmem:[#allocation7 + $0x78] sm:$0xf]  ;;  %v1113_v31 = vor.u32 %v1189_v24, %v1110_v25 }
  0x61   : > { %556 = vmatpush.bf16.msra.mxu1 %v1137_v11  ;;  %536 = vmatpush.bf16.msra.mxu0 %v1145_v19  ;;  %v1193_v30 = vld [vmem:[#allocation7 + $0x80] sm:$0xf0]  ;;  %v1117_v32 = vor.u32 %v1191_v28, %v1116_v26  ;;  %v1186_v33 = vld [vmem:[#allocation7 + $0x4c] sm:$0xf]  ;;  %v1098_v34 = vld [vmem:[#allocation7 + $0x54] sm:$0xf0] }
  0x62   : > { %575 = vmatpush.bf16.msra.mxu2 %v1141_v12  ;;  %1202 = vmatpush.bf16.msra.mxu3 %v1145_v19  ;;  %v1104_v35 = vld [vmem:[#allocation7 + $0x50] sm:$0xf]  ;;  %v1121_v36 = vor.u32 %v1193_v30, %v1120_v29  ;;  %v1188_v37 = vld [vmem:[#allocation7 + $0x58] sm:$0xf0]  ;;  %v1108_v38 = vld [vmem:[#allocation7 + $0x60] sm:$0xf]  ;;  %v1101_v40 = vor.u32 %v1186_v33, %v1098_v34 }
  0x63   : > { %v1190_v39 = vld [vmem:[#allocation7 + $0x68] sm:$0xf0]  ;;  %v1105_v41 = vor.u32 %v1188_v37, %v1104_v35  ;;  %v1183_v42 = vld [vmem:[#allocation7 + $0x34] sm:$0xf]  ;;  %v1086_v43 = vld [vmem:[#allocation7 + $0x3c] sm:$0xf0] }
  0x64   : > { %v1092_v44 = vld [vmem:[#allocation7 + $0x38] sm:$0xf]  ;;  %v1109_v45 = vor.u32 %v1190_v39, %v1108_v38  ;;  %v1185_v46 = vld [vmem:[#allocation7 + $0x40] sm:$0xf0]  ;;  %v1096_v47 = vld [vmem:[#allocation7 + $0x48] sm:$0xf]  ;;  %v1089_v49 = vor.u32 %v1183_v42, %v1086_v43 }
  0x65   : > { %557 = vmatpush.bf16.msra.mxu1 %v1125_v20  ;;  %537 = vmatpush.bf16.msra.mxu0 %v1133_v27  ;;  %v1187_v48 = vld [vmem:[#allocation7 + $0x50] sm:$0xf0]  ;;  %v1093_v50 = vor.u32 %v1185_v46, %v1092_v44  ;;  %v1180_v51 = vld [vmem:[#allocation7 + $0x1c] sm:$0xf]  ;;  %v1074_v52 = vld [vmem:[#allocation7 + $0x24] sm:$0xf0] }
  0x66   : > { %576 = vmatpush.bf16.msra.mxu2 %v1129_v23  ;;  %1203 = vmatpush.bf16.msra.mxu3 %v1133_v27  ;;  %v1080_v53 = vld [vmem:[#allocation7 + $0x20] sm:$0xf]  ;;  %v1097_v54 = vor.u32 %v1187_v48, %v1096_v47  ;;  %v1182_v55 = vld [vmem:[#allocation7 + $0x28] sm:$0xf0]  ;;  %v1084_v56 = vld [vmem:[#allocation7 + $0x30] sm:$0xf]  ;;  %v1077_v58 = vor.u32 %v1180_v51, %v1074_v52 }
  0x67   : > { %v1184_v57 = vld [vmem:[#allocation7 + $0x38] sm:$0xf0]  ;;  %v1081_v59 = vor.u32 %v1182_v55, %v1080_v53  ;;  %v1177_v60 = vld [vmem:[#allocation7 + $0x4] sm:$0xf]  ;;  %v1062_v61 = vld [vmem:[#allocation7 + $0xc] sm:$0xf0] }
  0x68   : > { %v1068_v62 = vld [vmem:[#allocation7 + $0x8] sm:$0xf]  ;;  %v1085_v63 = vor.u32 %v1184_v57, %v1084_v56  ;;  %v1179_v0 = vld [vmem:[#allocation7 + $0x10] sm:$0xf0]  ;;  %v1072_v1 = vld [vmem:[#allocation7 + $0x18] sm:$0xf]  ;;  %v1065_v3 = vor.u32 %v1177_v60, %v1062_v61 }
  0x69   : > { %558 = vmatpush.bf16.msra.mxu1 %v1113_v31  ;;  %538 = vmatpush.bf16.msra.mxu0 %v1121_v36  ;;  %v1181_v2 = vld [vmem:[#allocation7 + $0x20] sm:$0xf0]  ;;  %v1069_v4 = vor.u32 %v1179_v0, %v1068_v62  ;;  %v1060_v6 = vld [vmem:[#allocation7] sm:$0xf]  ;;  %v1178_v7 = vld [vmem:[#allocation7 + $0x8] sm:$0xf0] }
  0x6a   : > { %577 = vmatpush.bf16.msra.mxu2 %v1117_v32  ;;  %1204 = vmatpush.bf16.msra.mxu3 %v1121_v36  ;;  %v1073_v5 = vor.u32 %v1181_v2, %v1072_v1  ;;  %v1175_v8 = vld [vmem:[%s1902_s6] sm:$0xff]  ;;  %v1061_v9 = vor.u32 %v1178_v7, %v1060_v6  ;;  %v1176_v10 = vld [vmem:[%s1902_s6 + $0x8] sm:$0xff]  ;;  %s1935_s2 = sshll.u32 %s1657_s24, 2  ;;  %p1166_p0 = scmp.ne.s32.totalorder %s1657_s24, 2 }
  0x6b   : > { %v388_v11 = vld [vmem:[#allocation9] sm:$0x7]  ;;  %p769_p3 = scmp.lt.s32.totalorder %s1935_s2, 10  ;;  %s783_s5 = sadd.s32 1, %s1935_s2  ;;  %v761_v48 = vld [vmem:[#allocation2] sm:$0xff] }
  0x6c   : > { %v391_v12 = vperm.slane %v388_v11, 1  ;;  %v1929_v16 = vperm.slane %v388_v11, 2  ;;  %v1932_v21 = vperm.slane %v388_v11, 0  ;;  %p1945_p6 = scmp.lt.s32.totalorder %s783_s5, 10  ;;  %s799_s12 = sadd.s32 2, %s1935_s2 }
  0x6d   : > { %559 = vmatpush.bf16.msra.mxu1 %v1101_v40  ;;  %539 = vmatpush.bf16.msra.mxu0 %v1109_v45  ;;  %s770_s13 = scalar_select %p769_p3, 1, 0 }
  0x6e   : > { %578 = vmatpush.bf16.msra.mxu2 %v1105_v41  ;;  %1205 = vmatpush.bf16.msra.mxu3 %v1109_v45  ;;  %s785_s8 = scalar_select %p1945_p6, 1, 0 }
  0x6f   : > { %v771_v41 = vstv %s770_s13  ;;  %p2003_p9 = scmp.lt.s32.totalorder %s799_s12, 10  ;;  %s815_s23 = sadd.s32 3, %s1935_s2 }
  0x70   : > { %vm1953_vm0 = vcmp.eq.s32.totalorder %v771_v41, 1  ;;  %p2029_p10 = scmp.lt.s32.totalorder %s815_s23, 10 }
  0x71   : > { %560 = vmatpush.bf16.msra.mxu1 %v1089_v49  ;;  %540 = vmatpush.bf16.msra.mxu0 %v1097_v54  ;;  %s801_s6 = scalar_select %p2003_p9, 1, 0 }
  0x72   : > { %579 = vmatpush.bf16.msra.mxu2 %v1093_v50  ;;  %1206 = vmatpush.bf16.msra.mxu3 %v1097_v54  ;;  %s817_s7 = scalar_select %p2029_p10, 1, 0 }
  0x75   : > { %561 = vmatpush.bf16.msra.mxu1 %v1077_v58  ;;  %541 = vmatpush.bf16.msra.mxu0 %v1085_v63 }
  0x76   : > { %580 = vmatpush.bf16.msra.mxu2 %v1081_v59  ;;  %1207 = vmatpush.bf16.msra.mxu3 %v1085_v63 }
  0x79   : > { %562 = vmatpush.bf16.msra.mxu1 %v1065_v3  ;;  %542 = vmatpush.bf16.msra.mxu0 %v1073_v5  ;;  %v1968_v3 = vstv %s785_s8 }
  0x7a   : > { %581 = vmatpush.bf16.msra.mxu2 %v1069_v4  ;;  %1208 = vmatpush.bf16.msra.mxu3 %v1073_v5  ;;  %vm787_vm14 = vcmp.eq.s32.totalorder %v1968_v3, 1 }
  0x7c   : > { %563 = vmatmul.bf16.vlgmr.msra.gmra.mxu1 %v1175_v8 }
  0x7d   : > { %582 = vmatmul.bf16.vlgmr.msra.gmra.mxu2 %v1175_v8  ;;  %543 = vmatpush.bf16.msra.mxu0 %v1061_v9 }
  0x7e   : > { %1209 = vmatpush.bf16.msra.mxu3 %v1061_v9 }
  0x80   : > { %544 = vmatmul.bf16.vlgmr.msra.gmra.mxu0 %v1175_v8 }
  0x81   : > { %549 = vmatmul.bf16.vlgmr.msra.gmra.mxu3 %v1176_v10 }
  0x8c   : > { %568 = vmatmul.bf16.gmra.mxu1 %v1176_v10 }
  0x8d   : > { %587 = vmatmul.bf16.gmra.mxu2 %v1176_v10 }
  0xf9   : > { %v564_v13 = vpop.f32.mrf.mxu1 }
  0xfa   : > { %v565_v14 = vadd.f32 %v564_v13, %v391_v12 }
  0xfc   : > { %v1154_v15 = vmul.f32 -1.442695, %v565_v14 }
  0xfd   : > { %v545_v23 = vpop.f32.mrf.mxu0 }
  0xfe   : > { %1351 = vpow2.f32 %v1154_v15  ;;  %v546_v27 = vadd.f32 %v545_v23, %v1932_v21 }
 0x100   : > { %v583_v17 = vpop.f32.mrf.mxu2 }
 0x101   : > { %v584_v18 = vadd.f32 %v583_v17, %v1929_v16  ;;  %v566_v19 = vpop.f32.mrf.mxu1 }
 0x102   : > { %v567_v20 = vadd.f32 %v566_v19, %v391_v12 }
 0x103   : > { %v1158_v22 = vmul.f32 -1.442695, %v584_v18 }
 0x104   : > { %v1352_v24 = vpop.eup %1351  ;;  %v1155_v25 = vmul.f32 -1.442695, %v567_v20  ;;  %v550_v42 = vpop.f32.mrf.mxu3 }
 0x105   : > { %v613_v26 = vadd.f32 1.0, %v1352_v24  ;;  %1353 = vpow2.f32 %v1158_v22  ;;  %v547_v39 = vpop.f32.mrf.mxu0  ;;  %v551_v44 = vadd.f32 %v550_v42, %v1932_v21 }
 0x106   : > { %1355 = vpow2.f32 %v1155_v25  ;;  %v548_v49 = vadd.f32 %v547_v39, %v1932_v21 }
 0x107   : > { %1357 = vrcp.f32 %v613_v26  ;;  %v626_v43 = vand.u32 2147483647, %v613_v26  ;;  %v628_v47 = vand.u32 2147483648, %v613_v26  ;;  %vm622_vm1 = vweird.f32 %v613_v26 }
 0x108   : > { %v585_v28 = vpop.f32.mrf.mxu2  ;;  %1359 = vtanh.f32 %v546_v27 }
 0x109   : > { %v586_v29 = vadd.f32 %v585_v28, %v1929_v16  ;;  %v569_v30 = vpop.f32.mrf.mxu1  ;;  %vm1960_vm3 = vcmp.eq.f32.partialorder %v626_v43, 8.507059e+37  ;;  %v629_v62 = vor.u32 1.1754944e-38, %v628_v47 }
 0x10a   : > { %v570_v31 = vadd.f32 %v569_v30, %v391_v12 }
 0x10b   : > { %v1354_v32 = vpop.eup %1353  ;;  %v1159_v33 = vmul.f32 -1.442695, %v586_v29 }
 0x10c   : > { %v1356_v34 = vpop.eup %1355  ;;  %v1941_v35 = vadd.f32 1.0, %v1354_v32  ;;  %v1156_v36 = vmul.f32 -1.442695, %v570_v31 }
 0x10d   : > { %v1358_v37 = vpop.eup %1357  ;;  %v1943_v38 = vadd.f32 1.0, %v1356_v34  ;;  %1361 = vpow2.f32 %v1159_v33 }
 0x10e   : > { %v618_v40 = vmul.f32 %v1358_v37, %v613_v26  ;;  %1363 = vrcp.f32 %v1941_v35  ;;  %v1360_v45 = vpop.eup %1359  ;;  %vm623_vm2 = vweird.f32 %v1358_v37  ;;  %vm702_vm5 = vweird.f32 %v1941_v35 }
 0x10f   : > { %1365 = vrcp.f32 %v1943_v38  ;;  %v765_v58 = vsub.f32 %v1360_v45, %v761_v48  ;;  %vm624_vm4 = vmor %vm622_vm1, %vm623_vm2  ;;  %v706_v8 = vand.u32 2147483647, %v1941_v35  ;;  %v708_v9 = vand.u32 2147483648, %v1941_v35 }
 0x110   : > { %v619_v46 = vsub.f32 1.0, %v618_v40  ;;  %1367 = vpow2.f32 %v1156_v36  ;;  %v588_v50 = vpop.f32.mrf.mxu2  ;;  %v641_v18 = vand.u32 2147483647, %v1943_v38  ;;  %vm637_vm9 = vweird.f32 %v1943_v38 }
 0x111   : > { %v589_v52 = vadd.f32 %v588_v50, %v1929_v16  ;;  %v571_v53 = vpop.f32.mrf.mxu1  ;;  %1369 = vtanh.f32 %v551_v44  ;;  %vm1984_vm8 = vcmp.eq.f32.partialorder %v706_v8, 8.507059e+37  ;;  %v709_v26 = vor.u32 1.1754944e-38, %v708_v9  ;;  %v552_v44 = vpop.f32.mrf.mxu3 }
 0x112   : > { %v620_v54 = vmul.f32 %v1358_v37, %v619_v46  ;;  %v572_v55 = vadd.f32 %v571_v53, %v391_v12  ;;  %1371 = vtanh.f32 %v548_v49  ;;  %v643_v12 = vand.u32 2147483648, %v1943_v38 }
 0x113   : > { %v1362_v56 = vpop.eup %1361  ;;  %v1160_v59 = vmul.f32 -1.442695, %v589_v52  ;;  %vm642_vm12 = vcmp.eq.f32.partialorder %v641_v18, 8.507059e+37  ;;  %v553_v52 = vadd.f32 %v552_v44, %v1932_v21 }
 0x114   : > { %v1364_v60 = vpop.eup %1363  ;;  %v621_v61 = vadd.f32 %v1358_v37, %v620_v54  ;;  %v1964_v63 = vadd.f32 1.0, %v1362_v56  ;;  %v1157_v2 = vmul.f32 -1.442695, %v572_v55  ;;  %v644_v29 = vor.u32 1.1754944e-38, %v643_v12 }
 0x115   : > { %v1366_v0 = vpop.eup %1365  ;;  %v698_v1 = vmul.f32 %v1364_v60, %v1941_v35  ;;  %1373 = vpow2.f32 %v1160_v59  ;;  %vm703_vm6 = vweird.f32 %v1364_v60 }
 0x116   : > { %v1368_v4 = vpop.eup %1367  ;;  %v633_v5 = vmul.f32 %v1366_v0, %v1943_v38  ;;  %v625_v6 = vsel %vm624_vm4, %v1358_v37, %v621_v61  ;;  %1375 = vrcp.f32 %v1964_v63  ;;  %vm638_vm7 = vweird.f32 %v1366_v0  ;;  %vm704_vm10 = vmor %vm702_vm5, %vm703_vm6 }
 0x117   : > { %v699_v7 = vsub.f32 1.0, %v698_v1  ;;  %v630_v10 = vsel %vm1960_vm3, %v629_v62, %v625_v6  ;;  %v1978_v14 = vadd.f32 1.0, %v1368_v4  ;;  %v1980_v15 = vpop.eup %1369  ;;  %1377 = vpow2.f32 %v1157_v2  ;;  %vm639_vm11 = vmor %vm637_vm9, %vm638_vm7 }
 0x118   : > { %v634_v11 = vsub.f32 1.0, %v633_v5  ;;  %v766_v13 = vmul.f32 %v765_v58, %v630_v10  ;;  %v1372_v19 = vpop.eup %1371  ;;  %v590_v36 = vpop.f32.mrf.mxu2  ;;  %v721_v37 = vand.u32 2147483647, %v1964_v63  ;;  %v723_v41 = vand.u32 2147483648, %v1964_v63 }
 0x119   : > { %v700_v17 = vmul.f32 %v1364_v60, %v699_v7  ;;  %1379 = vrcp.f32 %v1978_v14  ;;  %vm717_vm15 = vweird.f32 %v1964_v63  ;;  %v658_v56 = vand.u32 2147483648, %v1978_v14 }
 0x11a   : > { %v635_v20 = vmul.f32 %v1366_v0, %v634_v11  ;;  %v767_v22 = vadd.f32 %v766_v13, %v761_v48  ;;  %v724_v54 = vor.u32 1.1754944e-38, %v723_v41  ;;  %v656_v57 = vand.u32 2147483647, %v1978_v14 }
 0x11b   : > { %v1374_v23 = vpop.eup %1373  ;;  %v701_v24 = vadd.f32 %v1364_v60, %v700_v17  ;;  %vm652_vm3 = vweird.f32 %v1978_v14  ;;  %v659_v7 = vor.u32 1.1754944e-38, %v658_v56 }
 0x11c   : > { %v1376_v27 = vpop.eup %1375  ;;  %v636_v28 = vadd.f32 %v1366_v0, %v635_v20  ;;  %v773_v30 = vsel %vm1953_vm0, %v767_v22, %v761_v48  ;;  %v1995_v31 = vadd.f32 1.0, %v1374_v23  ;;  %v591_v48 = vadd.f32 %v590_v36, %v1929_v16 }
 0x11d   : > { %v705_v32 = vsel %vm704_vm10, %v1364_v60, %v701_v24  ;;  %v713_v33 = vmul.f32 %v1376_v27, %v1964_v63  ;;  %v780_v34 = vsub.f32 %v1372_v19, %v773_v30  ;;  %v1378_v39 = vpop.eup %1377  ;;  %vm718_vm13 = vweird.f32 %v1376_v27 }
 0x11e   : > { %v640_v38 = vsel %vm639_vm11, %v1366_v0, %v636_v28  ;;  %v710_v35 = vsel %vm1984_vm8, %v709_v26, %v705_v32  ;;  %1381 = vrcp.f32 %v1995_v31  ;;  %v2008_v47 = vadd.f32 1.0, %v1378_v39  ;;  %vm719_vm1 = vmor %vm717_vm15, %vm718_vm13 }
 0x11f   : > { %v714_v40 = vsub.f32 1.0, %v713_v33  ;;  %v645_v42 = vsel %vm642_vm12, %v644_v29, %v640_v38  ;;  %v774_v43 = vmul.f32 %v773_v30, %v710_v35  ;;  %v1380_v45 = vpop.eup %1379  ;;  %vm722_vm0 = vcmp.eq.f32.partialorder %v721_v37, 8.507059e+37 }
 0x120   : > { %v781_v46 = vmul.f32 %v780_v34, %v645_v42  ;;  %v648_v50 = vmul.f32 %v1380_v45, %v1978_v14  ;;  %1383 = vrcp.f32 %v2008_v47  ;;  %v1161_v59 = vmul.f32 -1.442695, %v591_v48 }
 0x121   : > { %v715_v49 = vmul.f32 %v1376_v27, %v714_v40  ;;  %775 = vst [vmem:[%s1922_s10] sm:$0xff] %v774_v43  ;;  %vm653_vm2 = vweird.f32 %v1380_v45  ;;  %v802_v63 = vstv %s801_s6  ;;  %v736_v5 = vand.u32 2147483647, %v1995_v31 }
 0x122   : > { %v782_v51 = vadd.f32 %v781_v46, %v773_v30  ;;  %v649_v16 = vsub.f32 1.0, %v648_v50  ;;  %1385 = vpow2.f32 %v1161_v59  ;;  %v738_v6 = vand.u32 2147483648, %v1995_v31  ;;  %vm654_vm4 = vmor %vm652_vm3, %vm653_vm2 }
 0x123   : > { %v716_v53 = vadd.f32 %v1376_v27, %v715_v49  ;;  %vm657_vm5 = vcmp.eq.f32.partialorder %v656_v57, 8.507059e+37  ;;  %1387 = vtanh.f32 %v553_v52  ;;  %vm732_vm7 = vweird.f32 %v1995_v31 }
 0x124   : > { %v1382_v55 = vpop.eup %1381  ;;  %v788_v58 = vsel %vm787_vm14, %v782_v51, %v773_v30  ;;  %v650_v61 = vmul.f32 %v1380_v45, %v649_v16  ;;  %vm737_vm9 = vcmp.eq.f32.partialorder %v736_v5, 8.507059e+37  ;;  %v739_v17 = vor.u32 1.1754944e-38, %v738_v6 }
 0x125   : > { %v720_v60 = vsel %vm719_vm1, %v1376_v27, %v716_v53  ;;  %v728_v62 = vmul.f32 %v1382_v55, %v1995_v31  ;;  %v796_v3 = vsub.f32 %v1980_v15, %v788_v58  ;;  %vm733_vm6 = vweird.f32 %v1382_v55 }
 0x126   : > { %v725_v21 = vsel %vm722_vm0, %v724_v54, %v720_v60  ;;  %v651_v1 = vadd.f32 %v1380_v45, %v650_v61  ;;  %v1384_v4 = vpop.eup %1383  ;;  %vm734_vm8 = vmor %vm732_vm7, %vm733_vm6  ;;  %v673_v18 = vand.u32 2147483648, %v2008_v47  ;;  %vm803_vm10 = vcmp.eq.s32.totalorder %v802_v63, 1 }
 0x127   : > { %v729_v0 = vsub.f32 1.0, %v728_v62  ;;  %v789_v2 = vmul.f32 %v788_v58, %v725_v21  ;;  %v663_v9 = vmul.f32 %v1384_v4, %v2008_v47  ;;  %vm668_vm11 = vweird.f32 %v1384_v4 }
 0x128   : > { %v655_v10 = vsel %vm654_vm4, %v1380_v45, %v651_v1  ;;  %v1386_v15 = vpop.eup %1385  ;;  %v671_v24 = vand.u32 2147483647, %v2008_v47  ;;  %vm667_vm12 = vweird.f32 %v2008_v47  ;;  %v674_v29 = vor.u32 1.1754944e-38, %v673_v18 }
 0x129   : > { %v730_v8 = vmul.f32 %v1382_v55, %v729_v0  ;;  %1163 = vst [vmem:[%s1922_s10 + $0x8] sm:$0xff] %v789_v2  ;;  %v660_v11 = vsel %vm657_vm5, %v659_v7, %v655_v10  ;;  %v664_v13 = vsub.f32 1.0, %v663_v9  ;;  %v696_v23 = vadd.f32 1.0, %v1386_v15  ;;  %v1388_v26 = vpop.eup %1387  ;;  %vm669_vm13 = vmor %vm667_vm12, %vm668_vm11 }
 0x12a   : > { %v797_v14 = vmul.f32 %v796_v3, %v660_v11  ;;  %vm672_vm14 = vcmp.eq.f32.partialorder %v671_v24, 8.507059e+37  ;;  %v818_v33 = vstv %s817_s7 }
 0x12b   : > { %v731_v12 = vadd.f32 %v1382_v55, %v730_v8  ;;  %v665_v20 = vmul.f32 %v1384_v4, %v664_v13  ;;  %1389 = vrcp.f32 %v696_v23  ;;  %vm819_vm15 = vcmp.eq.s32.totalorder %v818_v33, 1 }
 0x12c   : > { %v798_v22 = vadd.f32 %v797_v14, %v788_v58  ;;  %v753_v41 = vand.u32 2147483648, %v696_v23  ;;  %v751_v43 = vand.u32 2147483647, %v696_v23  ;;  %vm747_vm1 = vweird.f32 %v696_v23 }
 0x12d   : > { %v735_v19 = vsel %vm734_vm8, %v1382_v55, %v731_v12  ;;  %v666_v27 = vadd.f32 %v1384_v4, %v665_v20 }
 0x12e   : > { %v740_v25 = vsel %vm737_vm9, %v739_v17, %v735_v19  ;;  %v804_v28 = vsel %vm803_vm10, %v798_v22, %v788_v58  ;;  %v754_v45 = vor.u32 1.1754944e-38, %v753_v41  ;;  %vm752_vm3 = vcmp.eq.f32.partialorder %v751_v43, 8.507059e+37 }
 0x12f   : > { %v805_v30 = vmul.f32 %v804_v28, %v740_v25  ;;  %v812_v31 = vsub.f32 %v1388_v26, %v804_v28  ;;  %v670_v32 = vsel %vm669_vm13, %v1384_v4, %v666_v27 }
 0x130   : > { %v675_v34 = vsel %vm672_vm14, %v674_v29, %v670_v32 }
 0x131   : > { %1164 = vst [vmem:[%s1922_s10 + $0x10] sm:$0xff] %v805_v30  ;;  %v813_v36 = vmul.f32 %v812_v31, %v675_v34  ;;  %v1390_v37 = vpop.eup %1389 }
 0x132   : > { %v743_v38 = vmul.f32 %v1390_v37, %v696_v23  ;;  %vm748_vm0 = vweird.f32 %v1390_v37 }
 0x133   : > { %v814_v35 = vadd.f32 %v813_v36, %v804_v28  ;;  %vm749_vm2 = vmor %vm747_vm1, %vm748_vm0 }
 0x134   : > { %v744_v39 = vsub.f32 1.0, %v743_v38 }
 0x135   : > { %v820_v40 = vsel %vm819_vm15, %v814_v35, %v804_v28 }
 0x136   : > { %824 = vst [vmem:[#allocation2] sm:$0xff] %v820_v40  ;;  %v745_v42 = vmul.f32 %v1390_v37, %v744_v39 }
 0x138   : > { %v746_v44 = vadd.f32 %v1390_v37, %v745_v42 }
 0x13a   : > { %v750_v46 = vsel %vm749_vm2, %v1390_v37, %v746_v44  ;;  %828 = sbr.rel (%p1166_p0) target bundleno = 320 (0x140), region = 60 }
 0x13b   : > { %v755_v47 = vsel %vm752_vm3, %v754_v45, %v750_v46 }
 0x13c   : > { %v821_v48 = vmul.f32 %v820_v40, %v755_v47 }
 0x13e   : > { %1165 = vst [vmem:[%s1922_s10 + $0x18] sm:$0xff] %v821_v48 }
 0x13f   : > { %829 = vst [vmem:[%s1924_s30] sm:$0xff] %v820_v40 }
 0x140 PF: > { %s1201_s14 = sshll.u32 %s1657_s24, 3  ;;  %s850_s13 = sshll.u32 %s1922_s10, 4  ;;  %s851_s13 = int_to_ptr.vmem [resolvable:$true] %s850_s13 }
 0x141   : > { %s847_s2 = sadd.s32 %s1661_s25, %s1201_s14  ;;  %s2171_s4 = sld [smem:[#allocation31_spill]] }
 0x142   : > { %s1171_s5 = sshll.u32 %s847_s2, 3  ;;  %s831_s6 = scalar_lea.sflag [#allocation6], %s1898_s27 }
 0x147   : > { %s849_s12 = scalar_lea.hbm %s2171_s4, %s1171_s5  ;;  %s1531_s10 = scalar_lea.hbm %s2171_s4, 192 }
 0x148   : > { %s852_s29 = sshll.u32 %s849_s12, 4  ;;  %s853_s29 = int_to_ptr.hbm [resolvable:$true] %s852_s29 }
 0x149   : > { %s1525_s23 = sshra.s32 %s853_s29, 4  ;;  %s1526_s23 = int_to_ptr.hbm [resolvable:$true] %s1525_s23 }
 0x14a   : > { %s1527_s9 = scalar_lea.hbm %s1526_s23, 32  ;;  %p1532_p5 = scmp.lt.s32.totalorder %s1526_s23, %s2171_s4 }
 0x14b   : > { %p1528_p2 = scmp.ne.s32.totalorder %s1526_s23, %s1527_s9  ;;  %p1533_p1 = scmp.lt.s32.totalorder %s1531_s10, %s1527_s9 }
 0x14d   : > { %p1529_p7 = pnand %p1528_p2, %p1868_p4  ;;  %p1534_p3 = por %p1533_p1, %p1532_p5 }
 0x14f   : > { %p1530_p11 = pneg %p1529_p7 }
 0x151   : > { %p1535_p6 = pnand %p1534_p3, %p1530_p11 }
 0x153   : > { %1538 = shalt.err (!%p1535_p6)
}
 0x154   : > { %s1681_s27 = smov 128   ;;  %s1682_s5 = smov 256  }
 0x155   : > { %s1683_s11 = smov 8   ;;  %s1172_s8 = sshll.u32 %s1661_s25, 3 }
 0x156   : > { %1223 = dma.vmem_to_hbm [thread:$0]  (%p1868_p4), %s851_s13, 512, %s853_s29, %s831_s6, %s1681_s27, %s1682_s5, %s1683_s11  }
 0x157   : > { %s2172_s24 = sld [smem:[#allocation32_spill]]  ;;  %s867_s23 = sshll.u32 %s1924_s30, 4  ;;  %s868_s23 = int_to_ptr.vmem [resolvable:$true] %s867_s23 }
 0x158   : > { %s836_s10 = scalar_lea.sflag [#allocation14], %s1913_s0 }
 0x15d   : > { %s2173_s3 = smov %s2172_s24  ;;  %s865_s14 = scalar_lea.hbm %s2172_s24, %s1172_s8 }
 0x15e   : > { %s869_s9 = sshll.u32 %s865_s14, 4  ;;  %s1559_s25 = scalar_lea.hbm %s2173_s3, 16  ;;  %s870_s9 = int_to_ptr.hbm [resolvable:$true] %s869_s9 }
 0x15f   : > { %s1553_s2 = sshra.s32 %s870_s9, 4  ;;  %s1554_s2 = int_to_ptr.hbm [resolvable:$true] %s1553_s2 }
 0x160   : > { %s1555_s4 = scalar_lea.hbm %s1554_s2, 8  ;;  %p1560_p4 = scmp.lt.s32.totalorder %s1554_s2, %s2173_s3 }
 0x161   : > { %p1556_p9 = scmp.ne.s32.totalorder %s1554_s2, %s1555_s4  ;;  %p1561_p2 = scmp.lt.s32.totalorder %s1559_s25, %s1555_s4 }
 0x163   : > { %p1557_p10 = pnand %p1556_p9, %p1879_p12  ;;  %p1562_p7 = por %p1561_p2, %p1560_p4 }
 0x165   : > { %p1558_p0 = pneg %p1557_p10 }
 0x167   : > { %p1563_p11 = pnand %p1562_p7, %p1558_p0 }
 0x169   : > { %1566 = shalt.err (!%p1563_p11)
}
 0x16a   : > { %1224 = dma.vmem_to_hbm [thread:$0]  (%p1879_p12), %s868_s23, 128, %s870_s9, %s836_s10  }
 0x16b PF: > { %p1253_p5 = scmp.ge.s32.totalorder %s1673_s28, 2  ;;  %s881_s0 = sand.u32 1, %s1645_s21  }
 0x16c   : > { %s882_s22 = scalar_lea.sflag [#allocation6], %s881_s0 }
 0x16d   : > { %p1242_p1 = pnand %p1253_p5, %p1875_p8 }
 0x16f   : > { %p1243_p3 = pneg %p1242_p1 }
 0x171   : > { %1624 = dma.done.wait (%p1243_p3), %s882_s22, 512  }
 0x172   : > { %1626 = vsyncadd (%p1243_p3), %s882_s22, 4294966784  ;;  %s891_s4 = sand.u32 1, %s1633_s18   ;;  %p1245_p6 = pnand %p1253_p5, %p1883_p13 }
 0x173   : > { %s892_s16 = scalar_lea.sflag [#allocation14], %s891_s4 }
 0x174   : > { %p1246_p9 = pneg %p1245_p6 }
 0x176   : > { %1628 = dma.done.wait (%p1246_p9), %s892_s16, 128  }
 0x177   : > { %1630 = vsyncadd (%p1246_p9), %s892_s16, 4294967168  ;;  %s29_s28 = sadd.s32 1, %s1673_s28   ;;  %s2174_s21 = sld [smem:[#allocation20_spill]] }
 0x178   : > { %p26_p12 = scmp.ge.s32.totalorder %s29_s28, 8   ;;  %s2175_s22 = sld [smem:[#allocation21_spill]] }
 0x179   : > { %s2176_s23 = sld [smem:[#allocation26_spill]]  ;;  %s2181_s18 = smov %s1637_s19 }
 0x17a   : > { %s2177_s24 = sld [smem:[#allocation22_spill]]  ;;  %s2182_s19 = smov %s1641_s20 }
 0x17b   : > { %s2178_s25 = sld [smem:[#allocation23_spill]]  ;;  %s2183_s20 = smov %s1846_s26 }
 0x17c   : > { %s2179_s17 = sld [smem:[#allocation24_spill]] }
 0x17d   : > { %s2180_s27 = sld [smem:[#allocation25_spill]] }
 0x17e   :  { %28 = sbr.rel (!%p26_p12) target bundleno = 21 (0x15), region = 133 }
 0x182   : > { %s2184_s26 = smov %s2179_s17 }
 0x183   :  { %898 = vsyncpa [#allocation5], 1 }
 0x184   :  { %900 = vsyncpa [#allocation5 + $0x1], 1 }
 0x185   :  { %901 = vsyncpa [#allocation8], 1 }
 0x186   :  { %902 = vsyncpa [#allocation11], 1 }
 0x187   :  { %904 = vsyncpa [#allocation11 + $0x1], 1 }
 0x188   :  { %905 = vsyncpa [#allocation6], 1 }
 0x189   :  { %907 = vsyncpa [#allocation6 + $0x1], 1 }
 0x18a   :  { %908 = vsyncpa [#allocation14], 1 }
 0x18b   :  { %910 = vsyncpa [#allocation14 + $0x1], 1 }

</bundles_post_ra>
